<compile_context>
chip_gen: v7x
topology: tpu7x:2x2x1
jax: 0.10.0
libtpu: 0.0.40
codegen_flags: <defaults>
</compile_context>

<pallas_src>
import math

import jax
import jax.numpy as jnp
from jax.experimental import pallas as pl
from jax.experimental.pallas import tpu as pltpu

LOG_SIG_MAX = 2.0
LOG_SIG_MIN = -5.0

_TILE_CAP = 4096  # v7x VMEM headroom cap (64 MiB physical per TC)


def _round_up(x, m):
    return ((x + m - 1) // m) * m


def _choose_tile(batch, tile_b):
    """Pick a batch tile: multiple of 16, <= cap, small padding, even steps."""
    tile_b = _round_up(max(16, min(int(tile_b), _TILE_CAP)), 16)
    if batch <= tile_b:
        return _round_up(max(batch, 16), 16)
    n_steps = -(-batch // tile_b)
    if n_steps % 2:               # even step count -> both v7x TCs stay busy
        n_steps += 1
    return _round_up(-(-batch // n_steps), 16)


def _policy_kernel(s_ref, w1_ref, b1_ref, w2_ref, b2_ref, wh_ref, bh_ref,
                   eps_ref, out_ref):
    # Trunk: 2 MXU matmuls (bf16 in, f32 acc) + VPU relu.
    h1 = jnp.dot(s_ref[...], w1_ref[...],
                 preferred_element_type=jnp.float32) + b1_ref[...]
    h1 = jnp.maximum(h1, 0.0)
    h2 = jnp.dot(h1.astype(jnp.bfloat16), w2_ref[...],
                 preferred_element_type=jnp.float32) + b2_ref[...]
    h2 = jnp.maximum(h2, 0.0)

    # Fused, lane-padded heads: lanes [0:a)=mu, [a:2a)=log_sigma, rest zeros.
    heads = jnp.dot(h2.astype(jnp.bfloat16), wh_ref[...],
                    preferred_element_type=jnp.float32) + bh_ref[...]

    a_dim = eps_ref.shape[1]
    mu = heads[:, :a_dim]
    log_sig = jnp.clip(heads[:, a_dim:2 * a_dim], LOG_SIG_MIN, LOG_SIG_MAX)
    sigma = jnp.exp(log_sig)
    # rsample in f32: mu + sigma * eps
    action = mu + sigma * eps_ref[...]

    # Full-width unmasked store (mu already at lanes [0:a), pad lanes are 0),
    # then overwrite the sigma / action lane ranges in place.
    out_ref[...] = heads.astype(out_ref.dtype)
    out_ref[:, a_dim:2 * a_dim] = sigma.astype(out_ref.dtype)
    out_ref[:, 2 * a_dim:3 * a_dim] = action.astype(out_ref.dtype)


def prepare_params(params):
    """One-time param prep: bf16 casts, mu/sigma head fusion, lane padding."""
    h2_dim, a_dim = params["wmu"].shape
    out_w = _round_up(3 * a_dim, 128)      # packed [mu|sigma|action] width

    wh = jnp.zeros((h2_dim, out_w), jnp.float32)
    wh = wh.at[:, :a_dim].set(params["wmu"])
    wh = wh.at[:, a_dim:2 * a_dim].set(params["wsig"])
    bh = jnp.zeros((1, out_w), jnp.float32)
    bh = bh.at[:, :a_dim].set(params["bmu"].reshape(1, -1))
    bh = bh.at[:, a_dim:2 * a_dim].set(params["bsig"].reshape(1, -1))

    return dict(
        w1=params["w1"].astype(jnp.bfloat16),
        b1=params["b1"].reshape(1, -1).astype(jnp.float32),
        w2=params["w2"].astype(jnp.bfloat16),
        b2=params["b2"].reshape(1, -1).astype(jnp.float32),
        wh=wh.astype(jnp.bfloat16),
        bh=bh,
        a_dim=int(a_dim),
    )


def normal_policy_forward(s, params, eps, *, tile_b=2048):
    """NormalPolicy forward pass in a single pipelined Pallas kernel.

    Args:
      s:      (B, s_dim) float state (already flattened).
      params: raw f32 param dict (from init_params) or prepared dict
              (from prepare_params) — prepare once and reuse for best perf.
      eps:    (B, a_dim) float standard-normal noise for rsample.
      tile_b: max batch tile (rows per grid step).

    Returns:
      (mu, sigma, action), each (B, a_dim) float32.
    """
    if "wh" not in params:
        params = prepare_params(params)

    B, s_dim = s.shape
    h1_dim = params["w1"].shape[1]
    h2_dim = params["w2"].shape[1]
    a_dim = params["a_dim"]
    out_w = params["wh"].shape[1]

    w1, b1 = params["w1"], params["b1"]
    w2, b2 = params["w2"], params["b2"]
    wh, bh = params["wh"], params["bh"]

    s_bf = s.astype(jnp.bfloat16)
    eps_f = eps.astype(jnp.float32)       # keep rsample noise at f32 precision

    tile = _choose_tile(B, tile_b)
    b_pad = _round_up(B, tile)
    if b_pad != B:
        s_bf = jnp.pad(s_bf, ((0, b_pad - B), (0, 0)))
        eps_f = jnp.pad(eps_f, ((0, b_pad - B), (0, 0)))
    grid = (b_pad // tile,)

    out_shape = jax.ShapeDtypeStruct((b_pad, out_w), jnp.float32)

    pinned = lambda i: (0, 0)     # weights/biases stay VMEM-resident
    rowblk = lambda i: (i, 0)     # batch-streamed operands / output

    flops = 2 * b_pad * (s_dim * h1_dim + h1_dim * h2_dim + h2_dim * out_w)
    bytes_accessed = (
        s_bf.size * 2 + eps_f.size * 4
        + w1.size * 2 + w2.size * 2 + wh.size * 2
        + b1.size * 4 + b2.size * 4 + bh.size * 4
        + b_pad * out_w * 4
    )
    cost = pl.CostEstimate(flops=flops,
                           transcendentals=b_pad * a_dim,
                           bytes_accessed=bytes_accessed)

    packed = pl.pallas_call(
        _policy_kernel,
        out_shape=out_shape,
        grid_spec=pltpu.PrefetchScalarGridSpec(
            num_scalar_prefetch=0,
            grid=grid,
            in_specs=[
                pl.BlockSpec((tile, s_dim), rowblk),      # s (streamed, bf16)
                pl.BlockSpec((s_dim, h1_dim), pinned),    # w1
                pl.BlockSpec((1, h1_dim), pinned),        # b1
                pl.BlockSpec((h1_dim, h2_dim), pinned),   # w2
                pl.BlockSpec((1, h2_dim), pinned),        # b2
                pl.BlockSpec((h2_dim, out_w), pinned),    # fused+padded head W
                pl.BlockSpec((1, out_w), pinned),         # fused+padded head b
                pl.BlockSpec((tile, a_dim), rowblk),      # eps (streamed, f32)
            ],
            out_specs=pl.BlockSpec((tile, out_w), rowblk),
        ),
        compiler_params=pltpu.CompilerParams(
            dimension_semantics=("parallel",),
            vmem_limit_bytes=48 * 1024 * 1024,
        ),
        cost_estimate=cost,
    )(s_bf, w1, b1, w2, b2, wh, bh, eps_f)

    packed = packed[:B]
    mu = packed[:, :a_dim]
    sigma = packed[:, a_dim:2 * a_dim]
    action = packed[:, 2 * a_dim:3 * a_dim]
    return mu, sigma, action


def init_params(key, s_dim, a_dim, hidden_dims=(256, 128)):
    """Deterministic init mirroring nn.Linear defaults (+ sigma weight override)."""
    keys = jax.random.split(key, 8)
    dims = [s_dim] + list(hidden_dims)

    def linear_init(kw, kb, fan_in, fan_out):
        bound = 1.0 / math.sqrt(fan_in)
        w = jax.random.uniform(kw, (fan_in, fan_out), jnp.float32, -bound, bound)
        b = jax.random.uniform(kb, (1, fan_out), jnp.float32, -bound, bound)
        return w, b

    w1, b1 = linear_init(keys[0], keys[1], dims[0], dims[1])
    w2, b2 = linear_init(keys[2], keys[3], dims[1], dims[2])
    wmu, bmu = linear_init(keys[4], keys[5], dims[2], a_dim)
    # sigma head: weight uniform(-0.001, 0.001), bias default linear init
    wsig = jax.random.uniform(keys[6], (dims[2], a_dim), jnp.float32, -0.001, 0.001)
    bound = 1.0 / math.sqrt(dims[2])
    bsig = jax.random.uniform(keys[7], (1, a_dim), jnp.float32, -bound, bound)

    return dict(w1=w1, b1=b1, w2=w2, b2=b2,
                wmu=wmu, bmu=bmu, wsig=wsig, bsig=bsig)


def _reference_forward(s, p, eps):
    """Pure-JAX reference mirroring the kernel's bf16-input / f32-accumulate path."""
    bf, f32 = jnp.bfloat16, jnp.float32
    s_b = s.astype(bf).astype(f32)
    w1 = p["w1"].astype(bf).astype(f32)
    w2 = p["w2"].astype(bf).astype(f32)
    wmu = p["wmu"].astype(bf).astype(f32)
    wsig = p["wsig"].astype(bf).astype(f32)

    h1 = jnp.maximum(s_b @ w1 + p["b1"], 0.0)
    h1 = h1.astype(bf).astype(f32)
    h2 = jnp.maximum(h1 @ w2 + p["b2"], 0.0)
    h2 = h2.astype(bf).astype(f32)
    mu = h2 @ wmu + p["bmu"]
    sigma = jnp.exp(jnp.clip(h2 @ wsig + p["bsig"], LOG_SIG_MIN, LOG_SIG_MAX))
    action = mu + sigma * eps.astype(f32)
    return mu, sigma, action


if __name__ == "__main__":
    key = jax.random.PRNGKey(0)
    k_params, k_s, k_eps, k_s2, k_eps2 = jax.random.split(key, 5)

    s_dim, a_dim = 32, 8
    raw_params = init_params(k_params, s_dim, a_dim)
    params = prepare_params(raw_params)   # one-time prep, reused across calls

    # Small smoke test (single grid step, padded 8 -> 16 rows).
    B = 8
    s = jax.random.normal(k_s, (B, s_dim), jnp.float32)
    eps = jax.random.normal(k_eps, (B, a_dim), jnp.float32)
    mu, sigma, action = normal_policy_forward(s, params, eps)
    jax.block_until_ready((mu, sigma, action))

    mu_r, sigma_r, act_r = _reference_forward(s, raw_params, eps)
    assert jnp.allclose(mu, mu_r, atol=2e-2, rtol=2e-2), "mu mismatch"
    assert jnp.allclose(sigma, sigma_r, atol=2e-2, rtol=2e-2), "sigma mismatch"
    assert jnp.allclose(action, act_r, atol=2e-2, rtol=2e-2), "action mismatch"

    # Multi-step grid + ragged batch test (exercises pipelining & padding).
    B2 = 40
    s2 = jax.random.normal(k_s2, (B2, s_dim), jnp.float32)
    eps2 = jax.random.normal(k_eps2, (B2, a_dim), jnp.float32)
    mu2, sigma2, act2 = normal_policy_forward(s2, params, eps2, tile_b=16)
    jax.block_until_ready((mu2, sigma2, act2))

    mu2_r, sigma2_r, act2_r = _reference_forward(s2, raw_params, eps2)
    assert mu2.shape == (B2, a_dim)
    assert jnp.allclose(mu2, mu2_r, atol=2e-2, rtol=2e-2), "mu mismatch (tiled)"
    assert jnp.allclose(sigma2, sigma2_r, atol=2e-2, rtol=2e-2), "sigma mismatch (tiled)"
    assert jnp.allclose(act2, act2_r, atol=2e-2, rtol=2e-2), "action mismatch (tiled)"

    print("KERNEL_OK")
</pallas_src>

<mosaic_0001>
module attributes {stable_mosaic.version = 11 : i64} {
  func.func @_policy_kernel(%arg0: i32, %arg1: memref<16x32xbf16, #tpu.memory_space<vmem>>, %arg2: memref<32x256xbf16, #tpu.memory_space<vmem>>, %arg3: memref<1x256xf32, #tpu.memory_space<vmem>>, %arg4: memref<256x128xbf16, #tpu.memory_space<vmem>>, %arg5: memref<1x128xf32, #tpu.memory_space<vmem>>, %arg6: memref<128x128xbf16, #tpu.memory_space<vmem>>, %arg7: memref<1x128xf32, #tpu.memory_space<vmem>>, %arg8: memref<16x8xf32, #tpu.memory_space<vmem>>, %arg9: memref<16x128xf32, #tpu.memory_space<vmem>>) attributes {dimension_semantics = [#tpu.dimension_semantics<parallel>], iteration_bounds = array<i64: 1>, scalar_prefetch = 0 : i64, scratch_operands = 0 : i64, tpu.core_type = #tpu.core_type<tc>, window_params = [{transform_indices = @transform_0, window_bounds = array<i64: 16, 32>}, {pipeline_mode = #tpu.pipeline_mode<synchronous>, transform_indices = @transform_1, window_bounds = array<i64: 32, 256>}, {pipeline_mode = #tpu.pipeline_mode<synchronous>, transform_indices = @transform_2, window_bounds = array<i64: 1, 256>}, {pipeline_mode = #tpu.pipeline_mode<synchronous>, transform_indices = @transform_3, window_bounds = array<i64: 256, 128>}, {pipeline_mode = #tpu.pipeline_mode<synchronous>, transform_indices = @transform_4, window_bounds = array<i64: 1, 128>}, {pipeline_mode = #tpu.pipeline_mode<synchronous>, transform_indices = @transform_5, window_bounds = array<i64: 128, 128>}, {pipeline_mode = #tpu.pipeline_mode<synchronous>, transform_indices = @transform_6, window_bounds = array<i64: 1, 128>}, {transform_indices = @transform_7, window_bounds = array<i64: 16, 8>}, {transform_indices = @transform_8, window_bounds = array<i64: 16, 128>}]} {
    %c0 = arith.constant 0 : index
    %c0_0 = arith.constant 0 : index
    %0 = vector.load %arg1[%c0, %c0_0] : memref<16x32xbf16, #tpu.memory_space<vmem>>, vector<16x32xbf16>
    %c0_1 = arith.constant 0 : index
    %c0_2 = arith.constant 0 : index
    %1 = vector.load %arg2[%c0_1, %c0_2] : memref<32x256xbf16, #tpu.memory_space<vmem>>, vector<32x256xbf16>
    %cst = arith.constant dense<0.000000e+00> : vector<16x256xf32>
    %2 = tpu.matmul %0, %1, %cst {dimension_numbers = #tpu.dot_dimension_numbers<[1], [0], [0], [1], [0, 0, 1, 1], [], []>} : vector<16x32xbf16>, vector<32x256xbf16>, vector<16x256xf32> -> vector<16x256xf32>
    %c0_3 = arith.constant 0 : index
    %c0_4 = arith.constant 0 : index
    %3 = vector.load %arg3[%c0_3, %c0_4] : memref<1x256xf32, #tpu.memory_space<vmem>>, vector<1x256xf32>
    %4 = vector.broadcast %3 : vector<1x256xf32> to vector<16x256xf32>
    %5 = arith.addf %2, %4 : vector<16x256xf32>
    %cst_5 = arith.constant 0.000000e+00 : f32
    %6 = vector.broadcast %cst_5 : f32 to vector<16x256xf32>
    %7 = arith.maximumf %5, %6 : vector<16x256xf32>
    %8 = arith.truncf %7 : vector<16x256xf32> to vector<16x256xbf16>
    %c0_6 = arith.constant 0 : index
    %c0_7 = arith.constant 0 : index
    %9 = vector.load %arg4[%c0_6, %c0_7] : memref<256x128xbf16, #tpu.memory_space<vmem>>, vector<256x128xbf16>
    %cst_8 = arith.constant dense<0.000000e+00> : vector<16x128xf32>
    %10 = tpu.matmul %8, %9, %cst_8 {dimension_numbers = #tpu.dot_dimension_numbers<[1], [0], [0], [1], [0, 0, 1, 1], [], []>} : vector<16x256xbf16>, vector<256x128xbf16>, vector<16x128xf32> -> vector<16x128xf32>
    %c0_9 = arith.constant 0 : index
    %c0_10 = arith.constant 0 : index
    %11 = vector.load %arg5[%c0_9, %c0_10] : memref<1x128xf32, #tpu.memory_space<vmem>>, vector<1x128xf32>
    %12 = vector.broadcast %11 : vector<1x128xf32> to vector<16x128xf32>
    %13 = arith.addf %10, %12 : vector<16x128xf32>
    %cst_11 = arith.constant 0.000000e+00 : f32
    %14 = vector.broadcast %cst_11 : f32 to vector<16x128xf32>
    %15 = arith.maximumf %13, %14 : vector<16x128xf32>
    %16 = arith.truncf %15 : vector<16x128xf32> to vector<16x128xbf16>
    %c0_12 = arith.constant 0 : index
    %c0_13 = arith.constant 0 : index
    %17 = vector.load %arg6[%c0_12, %c0_13] : memref<128x128xbf16, #tpu.memory_space<vmem>>, vector<128x128xbf16>
    %cst_14 = arith.constant dense<0.000000e+00> : vector<16x128xf32>
    %18 = tpu.matmul %16, %17, %cst_14 {dimension_numbers = #tpu.dot_dimension_numbers<[1], [0], [0], [1], [0, 0, 1, 1], [], []>} : vector<16x128xbf16>, vector<128x128xbf16>, vector<16x128xf32> -> vector<16x128xf32>
    %c0_15 = arith.constant 0 : index
    %c0_16 = arith.constant 0 : index
    %19 = vector.load %arg7[%c0_15, %c0_16] : memref<1x128xf32, #tpu.memory_space<vmem>>, vector<1x128xf32>
    %20 = vector.broadcast %19 : vector<1x128xf32> to vector<16x128xf32>
    %21 = arith.addf %18, %20 : vector<16x128xf32>
    %22 = vector.extract_strided_slice %21 {offsets = [0, 0], sizes = [16, 8], strides = [1, 1]} : vector<16x128xf32> to vector<16x8xf32>
    %23 = vector.extract_strided_slice %21 {offsets = [0, 8], sizes = [16, 8], strides = [1, 1]} : vector<16x128xf32> to vector<16x8xf32>
    %cst_17 = arith.constant -5.000000e+00 : f32
    %cst_18 = arith.constant 2.000000e+00 : f32
    %24 = vector.broadcast %cst_17 : f32 to vector<16x8xf32>
    %25 = arith.maximumf %24, %23 : vector<16x8xf32>
    %26 = vector.broadcast %cst_18 : f32 to vector<16x8xf32>
    %27 = arith.minimumf %26, %25 : vector<16x8xf32>
    %28 = math.exp %27 : vector<16x8xf32>
    %c0_19 = arith.constant 0 : index
    %c0_20 = arith.constant 0 : index
    %29 = vector.load %arg8[%c0_19, %c0_20] : memref<16x8xf32, #tpu.memory_space<vmem>>, vector<16x8xf32>
    %30 = arith.mulf %28, %29 : vector<16x8xf32>
    %31 = arith.addf %22, %30 : vector<16x8xf32>
    %c0_21 = arith.constant 0 : index
    %c0_22 = arith.constant 0 : index
    %32 = vector.load %arg9[%c0_21, %c0_22] : memref<16x128xf32, #tpu.memory_space<vmem>>, vector<16x128xf32>
    tpu.vector_store %arg9[%c0_21, %c0_22], %21 {strides = array<i32>} : memref<16x128xf32, #tpu.memory_space<vmem>>, vector<16x128xf32>,
    %c0_23 = arith.constant 0 : index
    %c8 = arith.constant 8 : index
    %33 = vector.load %arg9[%c0_23, %c8] : memref<16x128xf32, #tpu.memory_space<vmem>>, vector<16x8xf32>
    tpu.vector_store %arg9[%c0_23, %c8], %28 {strides = array<i32>} : memref<16x128xf32, #tpu.memory_space<vmem>>, vector<16x8xf32>,
    %c0_24 = arith.constant 0 : index
    %c16 = arith.constant 16 : index
    %34 = vector.load %arg9[%c0_24, %c16] : memref<16x128xf32, #tpu.memory_space<vmem>>, vector<16x8xf32>
    tpu.vector_store %arg9[%c0_24, %c16], %31 {strides = array<i32>} : memref<16x128xf32, #tpu.memory_space<vmem>>, vector<16x8xf32>,
    return
  }
  func.func @transform_0(%arg0: i32) -> (i32, i32) {
    %c0_i32 = arith.constant 0 : i32
    %c0_i32_0 = arith.constant 0 : i32
    return %arg0, %c0_i32 : i32, i32
  }
  func.func @transform_1(%arg0: i32) -> (i32, i32) {
    %c0_i32 = arith.constant 0 : i32
    %c0_i32_0 = arith.constant 0 : i32
    %c0_i32_1 = arith.constant 0 : i32
    return %c0_i32, %c0_i32_0 : i32, i32
  }
  func.func @transform_2(%arg0: i32) -> (i32, i32) {
    %c0_i32 = arith.constant 0 : i32
    %c0_i32_0 = arith.constant 0 : i32
    %c0_i32_1 = arith.constant 0 : i32
    return %c0_i32, %c0_i32_0 : i32, i32
  }
  func.func @transform_3(%arg0: i32) -> (i32, i32) {
    %c0_i32 = arith.constant 0 : i32
    %c0_i32_0 = arith.constant 0 : i32
    %c0_i32_1 = arith.constant 0 : i32
    return %c0_i32, %c0_i32_0 : i32, i32
  }
  func.func @transform_4(%arg0: i32) -> (i32, i32) {
    %c0_i32 = arith.constant 0 : i32
    %c0_i32_0 = arith.constant 0 : i32
    %c0_i32_1 = arith.constant 0 : i32
    return %c0_i32, %c0_i32_0 : i32, i32
  }
  func.func @transform_5(%arg0: i32) -> (i32, i32) {
    %c0_i32 = arith.constant 0 : i32
    %c0_i32_0 = arith.constant 0 : i32
    %c0_i32_1 = arith.constant 0 : i32
    return %c0_i32, %c0_i32_0 : i32, i32
  }
  func.func @transform_6(%arg0: i32) -> (i32, i32) {
    %c0_i32 = arith.constant 0 : i32
    %c0_i32_0 = arith.constant 0 : i32
    %c0_i32_1 = arith.constant 0 : i32
    return %c0_i32, %c0_i32_0 : i32, i32
  }
  func.func @transform_7(%arg0: i32) -> (i32, i32) {
    %c0_i32 = arith.constant 0 : i32
    %c0_i32_0 = arith.constant 0 : i32
    return %arg0, %c0_i32 : i32, i32
  }
  func.func @transform_8(%arg0: i32) -> (i32, i32) {
    %c0_i32 = arith.constant 0 : i32
    %c0_i32_0 = arith.constant 0 : i32
    return %arg0, %c0_i32 : i32, i32
  }
}

</mosaic_0001>

<bundles_post_ra>
// kernel: tpu_custom_call.1
= control target key start
LH: loop header
LB: loop body
LE: loop exit
PB: predicated region body
PF: predicated region fallthrough
CT: control target
= control target key end

     0   :  { %13 = vsyncpa [#allocation3], 0  ;;  %s886_s0 = inlined_call_operand.vmem [shape: bf16[16,32], index: 0, kind: input, shape index: {}]   ;;  %s887_s1 = inlined_call_operand.hbm [shape: bf16[32,256], index: 1, kind: input, shape index: {}]   ;;  %s888_s2 = inlined_call_operand.vmem [shape: f32[1,256], index: 2, kind: input, shape index: {}]   ;;  %s889_s3 = inlined_call_operand.hbm [shape: bf16[256,128], index: 3, kind: input, shape index: {}]   ;;  %s890_s4 = inlined_call_operand.vmem [shape: f32[1,128], index: 4, kind: input, shape index: {}]   ;;  %s891_s5 = inlined_call_operand.hbm [shape: bf16[128,128], index: 5, kind: input, shape index: {}]   ;;  %s892_s6 = inlined_call_operand.vmem [shape: f32[1,128], index: 6, kind: input, shape index: {}]   ;;  %s893_s7 = inlined_call_operand.vmem [shape: f32[16,8], index: 7, kind: input, shape index: {}]   ;;  %s894_s8 = inlined_call_operand.hbm [shape: f32[16,128], index: 8, kind: output, shape index: {}]  }
   0x1   :  { %14 = vsyncpa [#allocation6], 0 }
   0x2   :  { %15 = vsyncpa [#allocation4], 0  ;;  %s748_s27 = smov [#allocation5]   ;;  %s654_s9 = scalar_lea.hbm %s889_s3, 2048 }
   0x3   :  { %s37_s28 = sshll.u32 %s748_s27, 4  ;;  %p655_p0 = scmp.ne.s32.totalorder %s889_s3, %s654_s9  ;;  %s38_s28 = int_to_ptr.vmem [resolvable:$true] %s37_s28 }
   0x4   :  { %p658_p1 = scmp.lt.u32.totalorder %s654_s9, %s889_s3 }
   0x6   :  { %p660_p2 = pnand %p658_p1, %p655_p0 }
   0x8   :  { %663 = shalt.err (!%p660_p2)
}
   0x9   :  { %s664_s14 = scalar_lea.vmem %s38_s28, 2048  ;;  %p669_p4 = scmp.lt.s32.totalorder %s38_s28, %s38_s28 }
   0xa   :  { %p665_p3 = scmp.ne.s32.totalorder %s38_s28, %s664_s14  ;;  %p670_p5 = scmp.lt.s32.totalorder %s664_s14, %s664_s14 }
   0xc   :  { %p671_p6 = por %p670_p5, %p669_p4 }
   0xe   :  { %p672_p7 = pnand %p671_p6, %p665_p3 }
  0x10   :  { %675 = shalt.err (!%p672_p7)
}
  0x11   :  { %s749_s15 = smov 64   ;;  %s750_s16 = smov 4  }
  0x12   :  { %43 = dma.hbm_to_vmem [thread:$0]  %s889_s3, 2048, %s38_s28, [#allocation6], %s749_s15, %s749_s15, %s750_s16  }
  0x13   :  { %s751_s19 = smov [#allocation2]   ;;  %s676_s23 = scalar_lea.hbm %s887_s1, 512 }
  0x14   :  { %s23_s20 = sshll.u32 %s751_s19, 4  ;;  %p677_p8 = scmp.ne.s32.totalorder %s887_s1, %s676_s23  ;;  %s24_s20 = int_to_ptr.vmem [resolvable:$true] %s23_s20 }
  0x15   :  { %p680_p9 = scmp.lt.u32.totalorder %s676_s23, %s887_s1 }
  0x17   :  { %p682_p10 = pnand %p680_p9, %p677_p8 }
  0x19   :  { %685 = shalt.err (!%p682_p10)
}
  0x1a   :  { %s686_s29 = scalar_lea.vmem %s24_s20, 512  ;;  %p691_p12 = scmp.lt.s32.totalorder %s24_s20, %s24_s20 }
  0x1b   :  { %p687_p11 = scmp.ne.s32.totalorder %s24_s20, %s686_s29  ;;  %p692_p13 = scmp.lt.s32.totalorder %s686_s29, %s686_s29 }
  0x1d   :  { %p693_p0 = por %p692_p13, %p691_p12 }
  0x1f   :  { %p694_p1 = pnand %p693_p0, %p687_p11 }
  0x21   :  { %697 = shalt.err (!%p694_p1)
}
  0x22   :  { %s752_s3 = smov 128   ;;  %s753_s28 = smov 8  }
  0x23   :  { %29 = dma.hbm_to_vmem [thread:$0]  %s887_s1, 512, %s24_s20, [#allocation3], %s752_s3, %s752_s3, %s753_s28  }
  0x24   :  { %s754_s10 = smov [#allocation7]   ;;  %s698_s14 = scalar_lea.hbm %s891_s5, 1024 }
  0x25   :  { %s51_s11 = sshll.u32 %s754_s10, 4  ;;  %p699_p2 = scmp.ne.s32.totalorder %s891_s5, %s698_s14  ;;  %s52_s11 = int_to_ptr.vmem [resolvable:$true] %s51_s11 }
  0x26   :  { %p702_p3 = scmp.lt.u32.totalorder %s698_s14, %s891_s5 }
  0x28   :  { %p704_p4 = pnand %p702_p3, %p699_p2 }
  0x2a   :  { %707 = shalt.err (!%p704_p4)
}
  0x2b   :  { %s708_s22 = scalar_lea.vmem %s52_s11, 1024  ;;  %p713_p6 = scmp.lt.s32.totalorder %s52_s11, %s52_s11 }
  0x2c   :  { %p709_p5 = scmp.ne.s32.totalorder %s52_s11, %s708_s22  ;;  %p714_p7 = scmp.lt.s32.totalorder %s708_s22, %s708_s22 }
  0x2e   :  { %p715_p8 = por %p714_p7, %p713_p6 }
  0x30   :  { %p716_p9 = pnand %p715_p8, %p709_p5 }
  0x32   :  { %719 = shalt.err (!%p716_p9)
}
  0x33   :  { %57 = dma.hbm_to_vmem [thread:$0]  %s891_s5, 1024, %s52_s11, [#allocation6], %s749_s15, %s749_s15, %s750_s16  }
  0x34   :  { %742 = dma.done.wait [#allocation3], 512  }
  0x35   :  { %743 = vsyncadd [#allocation3], 4294966784 }
  0x36   :  { %744 = dma.done.wait [#allocation6], 3072  }
  0x37   :  { %745 = vsyncadd [#allocation6], 4294964224  ;;  %v755_v0 = vmov 0   ;;  %v619_v1 = vld [vmem:[#allocation2 + $0x4] ss:$8 sps:$4 sm:$0xff]   ;;  %vm115_vm0 = vcmask 261120   ;;  %v80_v28 = vlaneseq }
  0x38   :  { %151 = vmatprep.mubr.bf16.mxu0 %v755_v0  ;;  %v621_v2 = vld [vmem:[#allocation2] ss:$8 sps:$4 sm:$0xff]   ;;  %119 = vmatprep.subr.bf16.mxu0 %v619_v1  ;;  %v622_v3 = vld [vmem:[#allocation2 + $0x14] ss:$8 sps:$4 sm:$0xff]   ;;  %v624_v4 = vld [vmem:[#allocation2 + $0x10] ss:$8 sps:$4 sm:$0xff]  }
  0x39   :  { %120 = vmatpush1.bf16.msra.mxu0 %v621_v2  ;;  %v625_v5 = vld [vmem:[%s886_s0] sm:$0xff]   ;;  %v628_v8 = vld [vmem:[#allocation5 + $0x48] sm:$0xff]   ;;  %v630_v10 = vld [vmem:[#allocation5 + $0x50] sm:$0xff]   ;;  %v756_v23 = vmov 0.0   ;;  %v81_v29 = vshrl.u32 %v80_v28, 7  ;;  %vm757_vm1 = vmmov 0  }
  0x3a   :  { %121 = vmatprep.subr.bf16.mxu0 %v622_v3  ;;  %v626_v6 = vld [vmem:[#allocation5 + $0x40] sm:$0xff]   ;;  %v629_v9 = vld [vmem:[#allocation5 + $0x8] sm:$0xff]   ;;  %v631_v11 = vld [vmem:[#allocation5 + $0x10] sm:$0xff]   ;;  %vm491_vm2 = vcmask 130112   ;;  %vm502_vm3 = vcmask 195712   ;;  %s760_s30 = smov [#allocation8]  }
  0x3b   :  { %v627_v7 = vld [vmem:[#allocation5] sm:$0xff]   ;;  %555 = vmatprep.subr.bf16.mxu1 %v626_v6  ;;  %v632_v12 = vld [vmem:[#allocation5 + $0x58] sm:$0xff]   ;;  %v636_v16 = vld [vmem:[#allocation5 + $0x68] sm:$0xff]   ;;  %v82_v30 = vsub.s32 0, %v81_v29  ;;  %v86_v32 = vsub.s32 1, %v81_v29  ;;  %s510_s9 = sshll.u32 %s760_s30, 4  ;;  %s511_s9 = int_to_ptr.vmem [resolvable:$true] %s510_s9 }
  0x3c   :  { %556 = vmatpush3.bf16.msra.mxu1 %v627_v7  ;;  %v633_v13 = vld [vmem:[#allocation5 + $0x18] sm:$0xff]   ;;  %v634_v14 = vld [vmem:[#allocation5 + $0x60] sm:$0xff]   ;;  %v637_v17 = vld [vmem:[#allocation5 + $0x28] sm:$0xff]   ;;  %s720_s10 = scalar_lea.vmem %s511_s9, 256  ;;  %p725_p11 = scmp.lt.s32.totalorder %s511_s9, %s511_s9 }
  0x3d   :  { %122 = vmatpush1.bf16.msra.mxu0 %v624_v4  ;;  %557 = vmatprep.subr.bf16.mxu1 %v628_v8  ;;  %v635_v15 = vld [vmem:[#allocation5 + $0x20] sm:$0xff]   ;;  %v638_v18 = vld [vmem:[#allocation5 + $0x70] sm:$0xff]   ;;  %v640_v20 = vld [vmem:[#allocation5 + $0x78] sm:$0xff]   ;;  %p721_p10 = scmp.ne.s32.totalorder %s511_s9, %s720_s10  ;;  %p726_p12 = scmp.lt.s32.totalorder %s720_s10, %s720_s10 }
  0x3e   :  { %v639_v19 = vld [vmem:[#allocation5 + $0x30] sm:$0xff]   ;;  %v641_v21 = vld [vmem:[#allocation5 + $0x38] sm:$0xff]   ;;  %v642_v22 = vld [vmem:[#allocation7] sm:$0xff]   ;;  %586 = vmatprep.subr.bf16.mxu0 %v756_v23 }
  0x3f   :  { %v643_v24 = vld [vmem:[#allocation7 + $0x8] sm:$0xff]   ;;  %v644_v25 = vld [vmem:[#allocation7 + $0x10] sm:$0xff]   ;;  %v645_v26 = vld [vmem:[#allocation7 + $0x18] sm:$0xff]   ;;  %p727_p13 = por %p726_p12, %p725_p11 }
  0x40   :  { %528 = vmatmul.mubr.msk.bf16.vlgmr.msra.gmra.mrb[0].mxu0 %vm115_vm0, %v625_v5  ;;  %558 = vmatpush3.bf16.msra.mxu1 %v629_v9  ;;  %v646_v27 = vld [vmem:[#allocation7 + $0x20] sm:$0xff]   ;;  %v647_v49 = vld [vmem:[#allocation7 + $0x28] sm:$0xff]   ;;  %v648_v50 = vld [vmem:[#allocation7 + $0x30] sm:$0xff]  }
  0x41   :  { %559 = vmatprep.subr.bf16.mxu1 %v630_v10  ;;  %587 = vmatpush3.bf16.msra.mxu0 %v642_v22  ;;  %v78_v31 = vld [vmem:[%s888_s2] sm:$0x3]  ;;  %v649_v51 = vld [vmem:[#allocation7 + $0x38] sm:$0xff]   ;;  %v468_v53 = vld [vmem:[%s893_s7 + $0x8] sm:$0xff]  ;;  %p728_p0 = pnand %p727_p13, %p721_p10 }
  0x42   :  { %588 = vmatprep.subr.bf16.mxu0 %v756_v23  ;;  %v83_v33 = vrot.slane %v78_v31, %v82_v30  ;;  %v87_v34 = vrot.slane %v78_v31, %v86_v32  ;;  %602 = vmatprep.mubr.msk.bf16.mxu0 %vm757_vm1, %v756_v23  ;;  %v467_v52 = vld [vmem:[%s893_s7] sm:$0xff] }
  0x43   :  { %471 = vrot.lane.b32.xlu0 %v467_v52, %s753_s28  ;;  %v529_v55 = vld [vmem:[%s890_s4] ss:$0 sm:$0xff]  ;;  %s758_s4 = smov 120  }
  0x44   :  { %560 = vmatpush3.bf16.msra.mxu1 %v631_v11  ;;  %v546_v2 = vld [vmem:[%s892_s6] ss:$0 sm:$0xff]  ;;  %s759_s6 = smov 16  }
  0x45   :  { %561 = vmatprep.subr.bf16.mxu1 %v632_v12  ;;  %589 = vmatpush3.bf16.msra.mxu0 %v643_v24 }
  0x46   :  { %590 = vmatprep.subr.bf16.mxu0 %v756_v23 }
  0x47   :  { %473 = vrot.lane.b32.xlu0 %v468_v53, %s753_s28 }
  0x48   :  { %562 = vmatpush3.bf16.msra.mxu1 %v633_v13 }
  0x49   :  { %563 = vmatprep.subr.bf16.mxu1 %v634_v14  ;;  %591 = vmatpush3.bf16.msra.mxu0 %v644_v25 }
  0x4a   :  { %592 = vmatprep.subr.bf16.mxu0 %v756_v23 }
  0x4c   :  { %564 = vmatpush3.bf16.msra.mxu1 %v635_v15 }
  0x4d   :  { %565 = vmatprep.subr.bf16.mxu1 %v636_v16  ;;  %593 = vmatpush3.bf16.msra.mxu0 %v645_v26 }
  0x4e   :  { %594 = vmatprep.subr.bf16.mxu0 %v756_v23 }
  0x50   :  { %566 = vmatpush3.bf16.msra.mxu1 %v637_v17 }
  0x51   :  { %567 = vmatprep.subr.bf16.mxu1 %v638_v18  ;;  %595 = vmatpush3.bf16.msra.mxu0 %v646_v27 }
  0x52   :  { %596 = vmatprep.subr.bf16.mxu0 %v756_v23 }
  0x54   :  { %568 = vmatpush3.bf16.msra.mxu1 %v639_v19 }
  0x55   :  { %569 = vmatprep.subr.bf16.mxu1 %v640_v20  ;;  %597 = vmatpush3.bf16.msra.mxu0 %v647_v49 }
  0x56   :  { %598 = vmatprep.subr.bf16.mxu0 %v756_v23 }
  0x58   :  { %570 = vmatpush3.bf16.msra.mxu1 %v641_v21 }
  0x59   :  { %599 = vmatpush3.bf16.msra.mxu0 %v648_v50 }
  0x5a   :  { %600 = vmatprep.subr.bf16.mxu0 %v756_v23 }
  0x5d   :  { %601 = vmatpush3.bf16.msra.mxu0 %v649_v51 }
  0xb5   :  { %v472_v15 = vpop.permute.xlu0 %471 }
  0xb9   :  { %v474_v19 = vpop.permute.xlu0 %473 }
 0x113   :  { %v153_v35 = vpop.f32.mrb[0].mxu0 }
 0x114   :  { %v154_v36 = vadd.f32 %v153_v35, %v83_v33  ;;  %v155_v37 = vpop.f32.mrb[1].mxu0 }
 0x115   :  { %v156_v38 = vadd.f32 %v155_v37, %v87_v34  ;;  %v157_v39 = vpop.f32.mrb[2].mxu0 }
 0x116   :  { %v158_v40 = vadd.f32 %v157_v39, %v83_v33  ;;  %v159_v41 = vpop.f32.mrb[3].mxu0  ;;  %v162_v43 = vmax.f32 %v154_v36, 0.0 }
 0x117   :  { %v160_v42 = vadd.f32 %v159_v41, %v87_v34  ;;  %v163_v45 = vmax.f32 %v156_v38, 0.0 }
 0x118   :  { %v164_v44 = vmax.f32 %v158_v40, 0.0 }
 0x119   :  { %v165_v46 = vmax.f32 %v160_v42, 0.0 }
 0x11a   :  { %v166_v47 = vpack.c.bf16 %v164_v44, %v162_v43 }
 0x11b   :  { %v167_v48 = vpack.c.bf16 %v165_v46, %v163_v45 }
 0x11d   :  { %335 = vmatprep.mubr.bf16.mxu1 %v167_v48 }
 0x11e   :  { %336 = vmatmul.mubr.bf16.vlgmr.msra.gmra.mrb[0].mxu1 %v166_v47 }
 0x1f1   :  { %v571_v54 = vpop.f32.mrb[0].mxu1 }
 0x1f2   :  { %v572_v56 = vpop.f32.mrb[1].mxu1 }
 0x1f3   :  { %v573_v57 = vadd.f32 %v572_v56, %v571_v54  ;;  %v574_v58 = vpop.f32.mrb[2].mxu1 }
 0x1f4   :  { %v575_v59 = vpop.f32.mrb[3].mxu1 }
 0x1f5   :  { %v338_v60 = vadd.f32 %v573_v57, %v529_v55  ;;  %v576_v61 = vadd.f32 %v575_v59, %v574_v58 }
 0x1f7   :  { %v341_v62 = vadd.f32 %v576_v61, %v529_v55  ;;  %v344_v63 = vmax.f32 %v338_v60, 0.0 }
 0x1f9   :  { %v345_v0 = vmax.f32 %v341_v62, 0.0 }
 0x1fb   :  { %v346_v1 = vpack.c.bf16 %v345_v0, %v344_v63 }
 0x1fd   :  { %603 = vmatmul.mubr.bf16.vlgmr.msra.gmra.mrb[4].mxu0 %v346_v1 }
 0x2d0   :  { %v452_v3 = vpop.f32.mrb[4].mxu0 }
 0x2d1   :  { %v453_v4 = vadd.f32 %v546_v2, %v452_v3  ;;  %v604_v5 = vpop.f32.mrb[5].mxu0 }
 0x2d2   :  { %v455_v6 = vpop.f32.mrb[6].mxu0 }
 0x2d3   :  { %v459_v7 = vmax.f32 %v453_v4, -5.0  ;;  %489 = vst [vmem:[#allocation8] sm:$0xff] %v453_v4  ;;  %v456_v8 = vadd.f32 %v546_v2, %v455_v6  ;;  %v605_v9 = vpop.f32.mrb[7].mxu0 }
 0x2d5   :  { %v461_v10 = vmin.f32 %v459_v7, 2.0  ;;  %v460_v11 = vmax.f32 %v456_v8, -5.0  ;;  %490 = vst [vmem:[#allocation8 + $0x8] sm:$0xff] %v456_v8 }
 0x2d7   :  { %v463_v12 = vmul.f32 1.442695, %v461_v10  ;;  %v462_v13 = vmin.f32 %v460_v11, 2.0 }
 0x2d9   :  { %650 = vpow2.f32 %v463_v12  ;;  %v465_v14 = vmul.f32 1.442695, %v462_v13 }
 0x2db   :  { %652 = vpow2.f32 %v465_v14 }
 0x2e3   :  { %v651_v16 = vpop.eup %650 }
 0x2e4   :  { %v477_v17 = vmul.f32 %v651_v16, %v472_v15  ;;  %492 = vst.msk [vmem:[#allocation8] sm:$0xff] %vm491_vm2, %v651_v16 }
 0x2e5   :  { %v653_v18 = vpop.eup %652 }
 0x2e6   :  { %481 = vrot.lane.b32.xlu1 %v477_v17, %s758_s4  ;;  %493 = vst.msk [vmem:[#allocation8 + $0x8] sm:$0xff] %vm491_vm2, %v653_v18  ;;  %v478_v20 = vmul.f32 %v653_v18, %v474_v19 }
 0x2ea   :  { %483 = vrot.lane.b32.xlu1 %v478_v20, %s758_s4 }
 0x358   :  { %v482_v21 = vpop.permute.xlu1 %481 }
 0x359   :  { %v487_v22 = vadd.f32 %v482_v21, %v453_v4 }
 0x35b   :  { %496 = vrot.lane.b32.xlu0 %v487_v22, %s759_s6 }
 0x35c   :  { %v484_v23 = vpop.permute.xlu1 %483 }
 0x35d   :  { %v488_v24 = vadd.f32 %v484_v23, %v456_v8 }
 0x35f   :  { %498 = vrot.lane.b32.xlu1 %v488_v24, %s759_s6 }
 0x3cd   :  { %v497_v25 = vpop.permute.xlu0 %496 }
 0x3ce   :  { %503 = vst.msk [vmem:[#allocation8] sm:$0xff] %vm502_vm3, %v497_v25 }
 0x3d1   :  { %v499_v26 = vpop.permute.xlu1 %498 }
 0x3d2   :  { %504 = vst.msk [vmem:[#allocation8 + $0x8] sm:$0xff] %vm502_vm3, %v499_v26 }
 0x3d3   :  { %731 = shalt.err (!%p728_p0)
}
 0x3d4   :  { %s732_s13 = scalar_lea.hbm %s894_s8, 256 }
 0x3d5   :  { %p733_p1 = scmp.ne.s32.totalorder %s894_s8, %s732_s13  ;;  %p736_p2 = scmp.lt.u32.totalorder %s732_s13, %s894_s8 }
 0x3d7   :  { %p738_p3 = pnand %p736_p2, %p733_p1 }
 0x3d9   :  { %741 = shalt.err (!%p738_p3)
}
 0x3da   :  { %516 = dma.vmem_to_hbm [thread:$0]  %s511_s9, 256, %s894_s8, [#allocation4], %s752_s3, %s752_s3, %s753_s28  }
 0x3db   :  { %746 = dma.done.wait [#allocation4], 256  }
 0x3dc   :  { %747 = vsyncadd [#allocation4], 4294967040 }
 0x3dd   :  { %520 = vsyncpa [#allocation3], 1 }
 0x3de   :  { %521 = vsyncpa [#allocation6], 1 }
 0x3df   :  { %522 = vsyncpa [#allocation4], 1 }

</bundles_post_ra>
